<compile_context>
chip_gen: v6e
topology: v6e:2x2x1
jax: 0.10.0
libtpu: 0.0.40
codegen_flags: <defaults>
</compile_context>

<pallas_src>
import jax
import jax.numpy as jnp
from jax.experimental import pallas as pl
from jax.experimental.pallas import tpu as pltpu

LANE = 128     # TPU vreg lane width (pad feature/hidden/output dims to this)
SUBLANE = 8    # f32 sublane tiling (pad batch to a multiple of this)


def _round_up(n, m):
    return ((n + m - 1) // m) * m


# --------------------------------------------------------------------------
# Kernel: 3-layer MLP (normalization pre-folded into W1/b1), VMEM-resident.
# --------------------------------------------------------------------------
def _net_kernel(x_ref, w_ref, b_ref, o_ref):
    """
    x_ref: (B_pad, LANE)    raw features, zero-padded                 f32
    w_ref: (3, LANE, LANE)  zero-padded W1' (norm-folded), W2, W3     bf16
                            in (in, out) layout
    b_ref: (3, LANE)        zero-padded b1' (norm-folded), b2, b3     f32
    o_ref: (B_pad, LANE)    zero-padded logits                        f32
    """
    b = b_ref[...]                            # (3, LANE), f32

    # Layer 1: relu(x @ W1' + b1')  -- MXU in bf16, f32 accumulate + f32 VPU.
    h = jnp.dot(x_ref[...].astype(jnp.bfloat16), w_ref[0],
                preferred_element_type=jnp.float32) + b[0:1, :]
    h = jnp.maximum(h, 0.0)

    # Layer 2: relu(h @ W2 + b2)
    h = jnp.dot(h.astype(jnp.bfloat16), w_ref[1],
                preferred_element_type=jnp.float32) + b[1:2, :]
    h = jnp.maximum(h, 0.0)

    # Output layer (no activation); unmasked lane-dense 128-wide store.
    o_ref[...] = jnp.dot(h.astype(jnp.bfloat16), w_ref[2],
                         preferred_element_type=jnp.float32) + b[2:3, :]


# --------------------------------------------------------------------------
# Host-side parameter init / normalization fold / packing (setup, not hot path)
# --------------------------------------------------------------------------
def init_params(key, n_feature, n_hidden, n_output):
    """Torch nn.Linear default init (U(-1/sqrt(fan_in), 1/sqrt(fan_in))),
    weights already in (in, out) layout."""
    ks = jax.random.split(key, 6)

    def linear(kw, kb, fan_in, fan_out):
        bound = 1.0 / jnp.sqrt(jnp.float32(fan_in))
        w = jax.random.uniform(kw, (fan_in, fan_out), jnp.float32, -bound, bound)
        b = jax.random.uniform(kb, (fan_out,), jnp.float32, -bound, bound)
        return w, b

    w1, b1 = linear(ks[0], ks[1], n_feature, n_hidden)
    w2, b2 = linear(ks[2], ks[3], n_hidden, n_hidden)
    w3, b3 = linear(ks[4], ks[5], n_hidden, n_output)
    return (w1, b1, w2, b2, w3, b3)


def auto_norm_stats(raw):
    """autoNorm2 statistics: per-column min and 1/range (range==0 guarded)."""
    min_vals = raw.min(axis=0)
    max_vals = raw.max(axis=0)
    ranges = max_vals - min_vals
    ranges = jnp.where(ranges == 0, 1.0, ranges)
    return min_vals, 1.0 / ranges


def fold_norm_into_layer1(params, min_vals, inv_range):
    """Fold (x - min) * inv_range into the first Linear:
       W1' = diag(inv_range) @ W1,  b1' = b1 - (min * inv_range) @ W1."""
    w1, b1, w2, b2, w3, b3 = params
    w1f = w1 * inv_range[:, None]
    b1f = b1 - (min_vals * inv_range) @ w1
    return (w1f, b1f, w2, b2, w3, b3)


def pack_params(params, n_feature, n_hidden, n_output):
    """Pack 3 weight matrices into one zero-padded (3,128,128) bf16 slab and
    3 biases into one zero-padded (3,128) f32 slab."""
    assert max(n_feature, n_hidden, n_output) <= LANE
    w1, b1, w2, b2, w3, b3 = params

    w_packed = jnp.zeros((3, LANE, LANE), jnp.bfloat16)
    w_packed = w_packed.at[0, :n_feature, :n_hidden].set(w1.astype(jnp.bfloat16))
    w_packed = w_packed.at[1, :n_hidden, :n_hidden].set(w2.astype(jnp.bfloat16))
    w_packed = w_packed.at[2, :n_hidden, :n_output].set(w3.astype(jnp.bfloat16))

    b_packed = jnp.zeros((3, LANE), jnp.float32)
    b_packed = b_packed.at[0, :n_hidden].set(b1)
    b_packed = b_packed.at[1, :n_hidden].set(b2)
    b_packed = b_packed.at[2, :n_output].set(b3)
    return w_packed, b_packed


def pad_input(raw_x):
    """One-time (setup) zero-pad of raw features to (B_pad, LANE) f32."""
    B, F = raw_x.shape
    B_pad = _round_up(B, SUBLANE)
    x_pad = jnp.zeros((B_pad, LANE), jnp.float32)
    return x_pad.at[:B, :F].set(raw_x.astype(jnp.float32))


# --------------------------------------------------------------------------
# Hot path: single gridless pallas_call, returns the padded logits slab.
# --------------------------------------------------------------------------
@jax.jit
def net_forward_padded(x_pad, w_packed, b_packed):
    vmem_spec = pl.BlockSpec(memory_space=pltpu.MemorySpace.VMEM)
    return pl.pallas_call(
        _net_kernel,
        out_shape=jax.ShapeDtypeStruct(x_pad.shape, jnp.float32),
        in_specs=[vmem_spec, vmem_spec, vmem_spec],
        out_specs=vmem_spec,
    )(x_pad, w_packed, b_packed)


# --------------------------------------------------------------------------
# References for correctness checking
# --------------------------------------------------------------------------
def auto_norm2_ref(data):
    min_vals = data.min(axis=0)
    max_vals = data.max(axis=0)
    ranges = max_vals - min_vals
    ranges = jnp.where(ranges == 0, 1.0, ranges)
    return ((data - min_vals) / ranges).astype(jnp.float32)


def reference_forward_f32(x_norm, params):
    """Original f32 semantics (torch Net.forward on autoNorm2'd input)."""
    w1, b1, w2, b2, w3, b3 = params
    h = jnp.maximum(x_norm @ w1 + b1, 0.0)
    h = jnp.maximum(h @ w2 + b2, 0.0)
    return h @ w3 + b3


def reference_forward_kernel_numerics(raw_x, folded_params):
    """Mimics the kernel exactly: norm folded into layer 1, bf16 MXU operands,
    f32 accumulation / bias / ReLU."""
    w1, b1, w2, b2, w3, b3 = folded_params

    def mm(a, w):
        return jax.lax.dot(a.astype(jnp.bfloat16), w.astype(jnp.bfloat16),
                           preferred_element_type=jnp.float32)

    h = jnp.maximum(mm(raw_x, w1) + b1, 0.0)
    h = jnp.maximum(mm(h, w2) + b2, 0.0)
    return mm(h, w3) + b3


# --------------------------------------------------------------------------
if __name__ == "__main__":
    # Dating-classification style shapes: 3 features, 3 classes, small batch.
    batch, n_feature, n_hidden, n_output = 8, 3, 32, 3

    key = jax.random.PRNGKey(0)
    k_data, k_params = jax.random.split(key)

    # Synthetic "datingDataMat"-like raw data (autoNorm2 stats come from it).
    raw = jax.random.uniform(
        k_data, (batch, n_feature), jnp.float32, minval=0.0, maxval=100.0
    )

    params = init_params(k_params, n_feature, n_hidden, n_output)

    # ---- setup (outside the hot path): fold norm, pack params, pad input ----
    min_vals, inv_range = auto_norm_stats(raw)
    folded = fold_norm_into_layer1(params, min_vals, inv_range)
    w_packed, b_packed = pack_params(folded, n_feature, n_hidden, n_output)
    x_pad = pad_input(raw)

    # ---- hot path: one gridless Pallas call ----
    out_pad = net_forward_padded(x_pad, w_packed, b_packed)
    out_pad = jax.block_until_ready(out_pad)

    # Consumer-side slice (correctness checks only; not part of the hot path).
    out = out_pad[:batch, :n_output]
    assert out.shape == (batch, n_output)

    # Tight check against a reference that mimics the kernel's folded/bf16
    # numerics; looser check against the original f32 autoNorm2+Net semantics.
    ref_kernel = reference_forward_kernel_numerics(raw, folded)
    ref_f32 = reference_forward_f32(auto_norm2_ref(raw), params)
    assert jnp.allclose(out, ref_kernel, atol=1e-2, rtol=1e-2)
    assert jnp.allclose(out, ref_f32, atol=5e-2, rtol=5e-2)

    print("KERNEL_OK")
</pallas_src>

<mosaic_0001>
module attributes {stable_mosaic.version = 11 : i64} {
  func.func @_net_kernel(%arg0: memref<8x128xf32, #tpu.memory_space<vmem>>, %arg1: memref<3x128x128xbf16, #tpu.memory_space<vmem>>, %arg2: memref<3x128xf32, #tpu.memory_space<vmem>>, %arg3: memref<8x128xf32, #tpu.memory_space<vmem>>) attributes {dimension_semantics = [], scalar_prefetch = 0 : i64, scratch_operands = 0 : i64, tpu.core_type = #tpu.core_type<tc>} {
    %c0 = arith.constant 0 : index
    %c0_0 = arith.constant 0 : index
    %0 = vector.load %arg2[%c0, %c0_0] : memref<3x128xf32, #tpu.memory_space<vmem>>, vector<3x128xf32>
    %c0_1 = arith.constant 0 : index
    %c0_2 = arith.constant 0 : index
    %1 = vector.load %arg0[%c0_1, %c0_2] : memref<8x128xf32, #tpu.memory_space<vmem>>, vector<8x128xf32>
    %2 = arith.truncf %1 : vector<8x128xf32> to vector<8x128xbf16>
    %c0_3 = arith.constant 0 : index
    %c0_4 = arith.constant 0 : index
    %c0_5 = arith.constant 0 : index
    %3 = vector.load %arg1[%c0_3, %c0_4, %c0_5] : memref<3x128x128xbf16, #tpu.memory_space<vmem>>, vector<1x128x128xbf16>
    %4 = vector.shape_cast %3 : vector<1x128x128xbf16> to vector<128x128xbf16>
    %cst = arith.constant dense<0.000000e+00> : vector<8x128xf32>
    %5 = tpu.matmul %2, %4, %cst {dimension_numbers = #tpu.dot_dimension_numbers<[1], [0], [0], [1], [0, 0, 1, 1], [], []>} : vector<8x128xbf16>, vector<128x128xbf16>, vector<8x128xf32> -> vector<8x128xf32>
    %6 = vector.extract_strided_slice %0 {offsets = [0, 0], sizes = [1, 128], strides = [1, 1]} : vector<3x128xf32> to vector<1x128xf32>
    %7 = vector.broadcast %6 : vector<1x128xf32> to vector<8x128xf32>
    %8 = arith.addf %5, %7 : vector<8x128xf32>
    %cst_6 = arith.constant 0.000000e+00 : f32
    %9 = vector.broadcast %cst_6 : f32 to vector<8x128xf32>
    %10 = arith.maximumf %8, %9 : vector<8x128xf32>
    %11 = arith.truncf %10 : vector<8x128xf32> to vector<8x128xbf16>
    %c1 = arith.constant 1 : index
    %c0_7 = arith.constant 0 : index
    %c0_8 = arith.constant 0 : index
    %12 = vector.load %arg1[%c1, %c0_7, %c0_8] : memref<3x128x128xbf16, #tpu.memory_space<vmem>>, vector<1x128x128xbf16>
    %13 = vector.shape_cast %12 : vector<1x128x128xbf16> to vector<128x128xbf16>
    %cst_9 = arith.constant dense<0.000000e+00> : vector<8x128xf32>
    %14 = tpu.matmul %11, %13, %cst_9 {dimension_numbers = #tpu.dot_dimension_numbers<[1], [0], [0], [1], [0, 0, 1, 1], [], []>} : vector<8x128xbf16>, vector<128x128xbf16>, vector<8x128xf32> -> vector<8x128xf32>
    %15 = vector.extract_strided_slice %0 {offsets = [1, 0], sizes = [1, 128], strides = [1, 1]} : vector<3x128xf32> to vector<1x128xf32>
    %16 = vector.broadcast %15 : vector<1x128xf32> to vector<8x128xf32>
    %17 = arith.addf %14, %16 : vector<8x128xf32>
    %cst_10 = arith.constant 0.000000e+00 : f32
    %18 = vector.broadcast %cst_10 : f32 to vector<8x128xf32>
    %19 = arith.maximumf %17, %18 : vector<8x128xf32>
    %20 = arith.truncf %19 : vector<8x128xf32> to vector<8x128xbf16>
    %c2 = arith.constant 2 : index
    %c0_11 = arith.constant 0 : index
    %c0_12 = arith.constant 0 : index
    %21 = vector.load %arg1[%c2, %c0_11, %c0_12] : memref<3x128x128xbf16, #tpu.memory_space<vmem>>, vector<1x128x128xbf16>
    %22 = vector.shape_cast %21 : vector<1x128x128xbf16> to vector<128x128xbf16>
    %cst_13 = arith.constant dense<0.000000e+00> : vector<8x128xf32>
    %23 = tpu.matmul %20, %22, %cst_13 {dimension_numbers = #tpu.dot_dimension_numbers<[1], [0], [0], [1], [0, 0, 1, 1], [], []>} : vector<8x128xbf16>, vector<128x128xbf16>, vector<8x128xf32> -> vector<8x128xf32>
    %24 = vector.extract_strided_slice %0 {offsets = [2, 0], sizes = [1, 128], strides = [1, 1]} : vector<3x128xf32> to vector<1x128xf32>
    %25 = vector.broadcast %24 : vector<1x128xf32> to vector<8x128xf32>
    %26 = arith.addf %23, %25 : vector<8x128xf32>
    %c0_14 = arith.constant 0 : index
    %c0_15 = arith.constant 0 : index
    %27 = vector.load %arg3[%c0_14, %c0_15] : memref<8x128xf32, #tpu.memory_space<vmem>>, vector<8x128xf32>
    tpu.vector_store %arg3[%c0_14, %c0_15], %26 {strides = array<i32>} : memref<8x128xf32, #tpu.memory_space<vmem>>, vector<8x128xf32>,
    return
  }
}

</mosaic_0001>

<bundles_post_ra>
// kernel: net_forward_padded.1
= control target key start
LH: loop header
LB: loop body
LE: loop exit
PB: predicated region body
PF: predicated region fallthrough
CT: control target
= control target key end

     0   :  { %8 = vsyncpa [#allocation3], 0  ;;  %s702_s0 = inlined_call_operand.hbm [shape: f32[8,128], index: 0, kind: input, shape index: {}]   ;;  %s703_s1 = inlined_call_operand.hbm [shape: bf16[3,128,128], index: 1, kind: input, shape index: {}]   ;;  %s704_s2 = inlined_call_operand.hbm [shape: f32[3,128], index: 2, kind: input, shape index: {}]   ;;  %s705_s3 = inlined_call_operand.hbm [shape: f32[8,128], index: 3, kind: output, shape index: {}]  }
   0x1   :  { %9 = vsyncpa [#allocation6], 0 }
   0x2   :  { %10 = vsyncpa [#allocation4], 0  ;;  %s632_s12 = smov [#allocation5]  }
   0x3   :  { %s26_s13 = sshll.u32 %s632_s12, 4  ;;  %s27_s13 = int_to_ptr.vmem [resolvable:$true] %s26_s13 }
   0x4   :  { %s554_s14 = scalar_lea.vmem %s27_s13, 3072  ;;  %p559_p1 = scmp.lt.s32.totalorder %s27_s13, %s27_s13 }
   0x5   :  { %p555_p0 = scmp.ne.s32.totalorder %s27_s13, %s554_s14  ;;  %p560_p2 = scmp.lt.s32.totalorder %s554_s14, %s554_s14 }
   0x7   :  { %p561_p3 = por %p560_p2, %p559_p1 }
   0x9   :  { %p562_p4 = pnand %p561_p3, %p555_p0 }
   0xb   :  { %565 = shalt.err (!%p562_p4)
}
   0xc   :  { %s633_s15 = smov 64   ;;  %s634_s16 = smov 4  }
   0xd   :  { %32 = dma.hbm_to_vmem [thread:$0]  %s703_s1, 3072, %s27_s13, [#allocation6], %s633_s15, %s633_s15, %s634_s16  }
   0xe   :  { %s635_s19 = smov [#allocation2]   ;;  %s636_s21 = smov [#allocation7]  }
   0xf   :  { %s17_s20 = sshll.u32 %s635_s19, 4  ;;  %s39_s22 = sshll.u32 %s636_s21, 4  ;;  %s18_s20 = int_to_ptr.vmem [resolvable:$true] %s17_s20  ;;  %s40_s22 = int_to_ptr.vmem [resolvable:$true] %s39_s22 }
  0x10   :  { %s574_s23 = scalar_lea.vmem %s18_s20, 128  ;;  %p579_p6 = scmp.lt.s32.totalorder %s18_s20, %s18_s20 }
  0x11   :  { %p575_p5 = scmp.ne.s32.totalorder %s18_s20, %s574_s23  ;;  %p580_p7 = scmp.lt.s32.totalorder %s574_s23, %s574_s23 }
  0x13   :  { %p581_p8 = por %p580_p7, %p579_p6 }
  0x15   :  { %p582_p9 = pnand %p581_p8, %p575_p5 }
  0x17   :  { %585 = shalt.err (!%p582_p9)
}
  0x18   :  { %20 = dma.hbm_to_vmem [thread:$0]  %s702_s0, 128, %s18_s20, [#allocation3]  }
  0x19   :  { %s594_s26 = scalar_lea.vmem %s40_s22, 64  ;;  %p599_p11 = scmp.lt.s32.totalorder %s40_s22, %s40_s22 }
  0x1a   :  { %p595_p10 = scmp.ne.s32.totalorder %s40_s22, %s594_s26  ;;  %p600_p12 = scmp.lt.s32.totalorder %s594_s26, %s594_s26 }
  0x1c   :  { %p601_p13 = por %p600_p12, %p599_p11 }
  0x1e   :  { %p602_p0 = pnand %p601_p13, %p595_p10 }
  0x20   :  { %605 = shalt.err (!%p602_p0)
}
  0x21   :  { %42 = dma.hbm_to_vmem [thread:$0]  %s704_s2, 64, %s40_s22, [#allocation6]  }
  0x22   :  { %626 = dma.done.wait [#allocation3], 128  }
  0x23   :  { %627 = vsyncadd [#allocation3], 4294967168 }
  0x24   :  { %628 = dma.done.wait [#allocation6], 3136  }
  0x25   :  { %629 = vsyncadd [#allocation6], 4294964160  ;;  %v637_v0 = vmov 0.0   ;;  %vm638_vm0 = vmmov 0   ;;  %v522_v1 = vld [vmem:[#allocation5 + $0x38] sm:$0xff]   ;;  %v523_v2 = vld [vmem:[#allocation5 + $0x30] sm:$0xff]   ;;  %v72_v25 = vlaneseq }
  0x26   :  { %454 = vmatprep.subr.bf16.mxu0 %v637_v0  ;;  %470 = vmatprep.mubr.msk.bf16.mxu0 %vm638_vm0, %v637_v0  ;;  %v524_v3 = vld [vmem:[#allocation5 + $0x28] sm:$0xff]   ;;  %v530_v4 = vld [vmem:[#allocation5 + $0x78] sm:$0xff]   ;;  %v525_v5 = vld [vmem:[#allocation5 + $0x20] sm:$0xff]   ;;  %s639_s0 = smov [#allocation8]  }
  0x27   :  { %474 = vmatprep.subr.bf16.mxu1 %v637_v0  ;;  %490 = vmatprep.mubr.msk.bf16.mxu1 %vm638_vm0, %v637_v0  ;;  %v531_v6 = vld [vmem:[#allocation5 + $0x70] sm:$0xff]   ;;  %v526_v7 = vld [vmem:[#allocation5 + $0x18] sm:$0xff]   ;;  %v532_v8 = vld [vmem:[#allocation5 + $0x68] sm:$0xff]   ;;  %v73_v26 = vshrl.u32 %v72_v25, 7  ;;  %s393_s2 = sshll.u32 %s639_s0, 4  ;;  %s394_s2 = int_to_ptr.vmem [resolvable:$true] %s393_s2 }
  0x28   :  { %455 = vmatpush3.bf16.msra.mxu0 %v522_v1  ;;  %475 = vmatpush3.bf16.msra.mxu1 %v530_v4  ;;  %v527_v9 = vld [vmem:[#allocation5 + $0x10] sm:$0xff]   ;;  %v533_v10 = vld [vmem:[#allocation5 + $0x60] sm:$0xff]   ;;  %v528_v11 = vld [vmem:[#allocation5 + $0x8] sm:$0xff]   ;;  %s606_s28 = scalar_lea.vmem %s394_s2, 128  ;;  %p611_p2 = scmp.lt.s32.totalorder %s394_s2, %s394_s2 }
  0x29   :  { %456 = vmatprep.subr.bf16.mxu0 %v637_v0  ;;  %476 = vmatprep.subr.bf16.mxu1 %v637_v0  ;;  %v534_v12 = vld [vmem:[#allocation5 + $0x58] sm:$0xff]   ;;  %v529_v13 = vld [vmem:[#allocation5] sm:$0xff]   ;;  %v535_v15 = vld [vmem:[#allocation5 + $0x50] sm:$0xff]   ;;  %v74_v27 = vsub.s32 0, %v73_v26  ;;  %v185_v39 = vsub.s32 1, %v73_v26  ;;  %v296_v48 = vsub.s32 2, %v73_v26  ;;  %p607_p1 = scmp.ne.s32.totalorder %s394_s2, %s606_s28  ;;  %p612_p3 = scmp.lt.s32.totalorder %s606_s28, %s606_s28 }
  0x2a   :  { %v54_v14 = vld [vmem:[#allocation2] sm:$0xff]  ;;  %v536_v17 = vld [vmem:[#allocation5 + $0x48] sm:$0xff]   ;;  %v537_v18 = vld [vmem:[#allocation5 + $0x40] sm:$0xff]  }
  0x2b   :  { %v55_v16 = vpack.c.bf16 %v54_v14, %v54_v14  ;;  %v538_v19 = vld [vmem:[#allocation5 + $0xb8] sm:$0xff]   ;;  %v539_v20 = vld [vmem:[#allocation5 + $0xb0] sm:$0xff]   ;;  %v540_v21 = vld [vmem:[#allocation5 + $0xa8] sm:$0xff]   ;;  %p613_p4 = por %p612_p3, %p611_p2 }
  0x2c   :  { %457 = vmatpush3.bf16.msra.mxu0 %v523_v2  ;;  %477 = vmatpush3.bf16.msra.mxu1 %v531_v6  ;;  %v541_v22 = vld [vmem:[#allocation5 + $0xa0] sm:$0xff]   ;;  %v542_v23 = vld [vmem:[#allocation5 + $0x98] sm:$0xff]   ;;  %v543_v24 = vld [vmem:[#allocation5 + $0x90] sm:$0xff]  }
  0x2d   :  { %458 = vmatprep.subr.bf16.mxu0 %v637_v0  ;;  %478 = vmatprep.subr.bf16.mxu1 %v637_v0  ;;  %v53_v28 = vld [vmem:[#allocation7] sm:$0x7]  ;;  %v544_v37 = vld [vmem:[#allocation5 + $0x88] sm:$0xff]   ;;  %p614_p5 = pnand %p613_p4, %p607_p1 }
  0x2e   :  { %v75_v29 = vrot.slane %v53_v28, %v74_v27  ;;  %v545_v38 = vld [vmem:[#allocation5 + $0x80] sm:$0xff]   ;;  %v186_v40 = vrot.slane %v53_v28, %v185_v39  ;;  %v297_v49 = vrot.slane %v53_v28, %v296_v48 }
  0x30   :  { %459 = vmatpush3.bf16.msra.mxu0 %v524_v3  ;;  %479 = vmatpush3.bf16.msra.mxu1 %v532_v8 }
  0x31   :  { %460 = vmatprep.subr.bf16.mxu0 %v637_v0  ;;  %480 = vmatprep.subr.bf16.mxu1 %v637_v0 }
  0x34   :  { %461 = vmatpush3.bf16.msra.mxu0 %v525_v5  ;;  %481 = vmatpush3.bf16.msra.mxu1 %v533_v10 }
  0x35   :  { %462 = vmatprep.subr.bf16.mxu0 %v637_v0  ;;  %482 = vmatprep.subr.bf16.mxu1 %v637_v0 }
  0x38   :  { %463 = vmatpush3.bf16.msra.mxu0 %v526_v7  ;;  %483 = vmatpush3.bf16.msra.mxu1 %v534_v12 }
  0x39   :  { %464 = vmatprep.subr.bf16.mxu0 %v637_v0  ;;  %484 = vmatprep.subr.bf16.mxu1 %v637_v0 }
  0x3c   :  { %465 = vmatpush3.bf16.msra.mxu0 %v527_v9  ;;  %485 = vmatpush3.bf16.msra.mxu1 %v535_v15 }
  0x3d   :  { %466 = vmatprep.subr.bf16.mxu0 %v637_v0  ;;  %486 = vmatprep.subr.bf16.mxu1 %v637_v0 }
  0x40   :  { %467 = vmatpush3.bf16.msra.mxu0 %v528_v11  ;;  %487 = vmatpush3.bf16.msra.mxu1 %v536_v17 }
  0x41   :  { %468 = vmatprep.subr.bf16.mxu0 %v637_v0  ;;  %488 = vmatprep.subr.bf16.mxu1 %v637_v0 }
  0x44   :  { %469 = vmatpush3.bf16.msra.mxu0 %v529_v13  ;;  %489 = vmatpush3.bf16.msra.mxu1 %v537_v18 }
  0x45   :  { %494 = vmatprep.subr.bf16.mxu0 %v637_v0 }
  0x47   :  { %471 = vmatmul.mubr.bf16.vlgmr.msra.gmra.mxu0 %v55_v16 }
  0x48   :  { %510 = vmatprep.mubr.msk.bf16.mxu0 %vm638_vm0, %v637_v0  ;;  %495 = vmatpush3.bf16.msra.mxu0 %v538_v19 }
  0x49   :  { %496 = vmatprep.subr.bf16.mxu0 %v637_v0 }
  0x4c   :  { %497 = vmatpush3.bf16.msra.mxu0 %v539_v20 }
  0x4d   :  { %498 = vmatprep.subr.bf16.mxu0 %v637_v0 }
  0x50   :  { %499 = vmatpush3.bf16.msra.mxu0 %v540_v21 }
  0x51   :  { %500 = vmatprep.subr.bf16.mxu0 %v637_v0 }
  0x54   :  { %501 = vmatpush3.bf16.msra.mxu0 %v541_v22 }
  0x55   :  { %502 = vmatprep.subr.bf16.mxu0 %v637_v0 }
  0x58   :  { %503 = vmatpush3.bf16.msra.mxu0 %v542_v23 }
  0x59   :  { %504 = vmatprep.subr.bf16.mxu0 %v637_v0 }
  0x5c   :  { %505 = vmatpush3.bf16.msra.mxu0 %v543_v24 }
  0x5d   :  { %506 = vmatprep.subr.bf16.mxu0 %v637_v0 }
  0x60   :  { %507 = vmatpush3.bf16.msra.mxu0 %v544_v37 }
  0x61   :  { %508 = vmatprep.subr.bf16.mxu0 %v637_v0 }
  0x64   :  { %509 = vmatpush3.bf16.msra.mxu0 %v545_v38 }
 0x107   :  { %v158_v30 = vpop.f32.mrf.mxu0 }
 0x108   :  { %v159_v31 = vadd.f32 %v158_v30, %v75_v29 }
 0x109   :  { %v472_v32 = vpop.f32.mrf.mxu0 }
 0x10a   :  { %v164_v33 = vmax.f32 %v159_v31, 0.0 }
 0x10b   :  { %v161_v34 = vpop.f32.mrf.mxu0 }
 0x10c   :  { %v165_v35 = vpack.c.bf16 %v164_v33, %v164_v33 }
 0x10d   :  { %v473_v36 = vpop.f32.mrf.mxu0 }
 0x10e   :  { %491 = vmatmul.mubr.bf16.vlgmr.msra.gmra.mxu1 %v165_v35 }
 0x1ce   :  { %v269_v41 = vpop.f32.mrf.mxu1 }
 0x1cf   :  { %v270_v42 = vadd.f32 %v269_v41, %v186_v40 }
 0x1d0   :  { %v492_v43 = vpop.f32.mrf.mxu1 }
 0x1d1   :  { %v275_v44 = vmax.f32 %v270_v42, 0.0 }
 0x1d2   :  { %v272_v45 = vpop.f32.mrf.mxu1 }
 0x1d3   :  { %v276_v46 = vpack.c.bf16 %v275_v44, %v275_v44 }
 0x1d4   :  { %v493_v47 = vpop.f32.mrf.mxu1 }
 0x1d5   :  { %511 = vmatmul.mubr.bf16.vlgmr.msra.gmra.mxu0 %v276_v46 }
 0x295   :  { %v380_v50 = vpop.f32.mrf.mxu0 }
 0x296   :  { %v381_v51 = vadd.f32 %v380_v50, %v297_v49 }
 0x297   :  { %v512_v52 = vpop.f32.mrf.mxu0 }
 0x298   :  { %386 = vst [vmem:[#allocation8] sm:$0xff] %v381_v51 }
 0x299   :  { %v383_v53 = vpop.f32.mrf.mxu0 }
 0x29a   :  { %617 = shalt.err (!%p614_p5)
}
 0x29b   :  { %396 = dma.vmem_to_hbm [thread:$0]  %s394_s2, 128, %s705_s3, [#allocation4]   ;;  %v513_v54 = vpop.f32.mrf.mxu0 }
 0x29c   :  { %630 = dma.done.wait [#allocation4], 128  }
 0x29d   :  { %631 = vsyncadd [#allocation4], 4294967168 }
 0x29e   :  { %400 = vsyncpa [#allocation3], 1 }
 0x29f   :  { %401 = vsyncpa [#allocation6], 1 }
 0x2a0   :  { %402 = vsyncpa [#allocation4], 1 }

</bundles_post_ra>
